<compile_context>
chip_gen: v7x
topology: tpu7x:2x2x1
jax: 0.10.0
libtpu: 0.0.40
codegen_flags: <defaults>
</compile_context>

<pallas_src>
import functools

import jax
import jax.numpy as jnp
from jax import lax
from jax.experimental import pallas as pl
from jax.experimental.pallas import tpu as pltpu

_LANES = 128
_SUBLANES = 8
_TARGET_BLOCK_BYTES = 4 * 1024 * 1024    # ~4 MiB per input block per grid step
_CHUNK_ROWS = 64                          # in-kernel compute chunk (rows of 128 lanes)
_VMEM_LIMIT_BYTES = 32 * 1024 * 1024      # 2 inputs x 2 bufs x 4 MiB = 16 MiB + headroom


def _margin_ties_kernel(margin_ref, a_ref, b_ref, out_ref, *,
                        num_tiles, tiles_per_core, tile_rows, chunk_rows,
                        last_valid_rows, has_overflow):
    c = pl.program_id(0)                  # core (parallel) axis
    i = pl.program_id(1)                  # per-core tile loop (reduction axis)
    gt = c * tiles_per_core + i           # global tile index owned by this step

    @pl.when(i == 0)
    def _init():
        out_ref[...] = jnp.zeros_like(out_ref)

    margin = margin_ref[0]

    def _accum_chunk(r0, row_lo, row_hi):
        # Load a (chunk_rows, 128) slab in native dtype, hinge in f32, reduce
        # to (8, 128) with pure vreg-wise adds, accumulate into the resident
        # output block. Live ranges stay at a handful of vregs per chunk.
        a = a_ref[pl.ds(r0, chunk_rows), :].astype(jnp.float32)
        b = b_ref[pl.ds(r0, chunk_rows), :].astype(jnp.float32)
        h = jnp.maximum(jnp.abs(a - b) - margin, 0.0)
        if row_lo > 0 or row_hi < chunk_rows:
            # Select (never multiply): garbage rows beyond the array bound may
            # contain NaN/Inf and must be discarded, not scaled.
            rows = lax.broadcasted_iota(jnp.int32, h.shape, 0)
            h = jnp.where((rows >= row_lo) & (rows < row_hi), h, 0.0)
        out_ref[0] += h.reshape(-1, _SUBLANES, _LANES).sum(axis=0)

    def _full_tile():
        n_chunks = tile_rows // chunk_rows   # chunk_rows divides tile_rows

        def body(k, carry):
            _accum_chunk(pl.multiple_of(k * chunk_rows, chunk_rows),
                         0, chunk_rows)
            return carry

        lax.fori_loop(0, n_chunks, body, 0)

    def _ragged_tile():
        fc = last_valid_rows // chunk_rows
        rem = last_valid_rows - fc * chunk_rows
        if fc > 0:
            def body(k, carry):
                _accum_chunk(pl.multiple_of(k * chunk_rows, chunk_rows),
                             0, chunk_rows)
                return carry

            lax.fori_loop(0, fc, body, 0)
        if rem > 0:
            # One statically-masked partial chunk; keep the load inside the
            # VMEM block by sliding the window back if necessary.
            r0 = min(fc * chunk_rows, tile_rows - chunk_rows)
            _accum_chunk(pl.multiple_of(r0, chunk_rows),
                         fc * chunk_rows - r0, last_valid_rows - r0)

    even_last = last_valid_rows == tile_rows
    if even_last and not has_overflow:
        # Perfectly even split: zero masking / branching in the steady state.
        _full_tile()
    elif even_last:
        pl.when(gt < num_tiles)(_full_tile)           # skip the overflow step
    else:
        pl.when(gt < num_tiles - 1)(_full_tile)
        pl.when(gt == num_tiles - 1)(_ragged_tile)    # masked last tile only


def margin_ranking_loss_with_ties(input1, input2, margin=0.0, reduction="mean"):
    if reduction != "mean":
        # TODO(synk): module spec only supports 'mean'; 'none'/'sum' raise here too.
        raise Exception(
            "Reduction type not valid. Currently, only allows for 'mean'."
        )
    a = jnp.asarray(input1)
    b = jnp.asarray(input2)
    assert a.shape == b.shape

    n = int(a.size)
    margin_arr = jnp.full((1,), margin, dtype=jnp.float32)

    R = n // _LANES              # full 128-lane rows handled by the kernel
    n_main = R * _LANES

    itemsize = jnp.dtype(a.dtype).itemsize
    # Sublane granularity of the second-to-last block dim: 8 f32 / 16 bf16 / 32 i8.
    row_granule = _SUBLANES * max(1, 4 // max(itemsize, 1))

    total = jnp.float32(0.0)
    tail_start = 0

    if R >= row_granule:
        # ---- tile geometry: dtype-aware ~4 MiB byte cap per input block ----
        if R >= _CHUNK_ROWS:
            chunk_rows = _CHUNK_ROWS          # multiple of every row_granule
        else:
            chunk_rows = (R // row_granule) * row_granule
        cap_rows = max(
            chunk_rows,
            (_TARGET_BLOCK_BYTES // (_LANES * itemsize)) // chunk_rows * chunk_rows,
        )
        tile_rows = min(cap_rows, (R // chunk_rows) * chunk_rows)
        num_tiles = -(-R // tile_rows)
        last_valid_rows = R - (num_tiles - 1) * tile_rows

        # ---- shard the tile loop across (up to) 2 TensorCores (v7x) ----
        grid_cores = 2 if num_tiles >= 2 else 1
        tiles_per_core = -(-num_tiles // grid_cores)
        has_overflow = grid_cores * tiles_per_core != num_tiles

        # ---- lane-aligned 2-D views; avoid an HBM relayout when possible ----
        if n_main == n:
            a2 = a.reshape(R, _LANES)     # layout-preserving, no copy
            b2 = b.reshape(R, _LANES)
        else:
            a2 = a.reshape(-1)[:n_main].reshape(R, _LANES)
            b2 = b.reshape(-1)[:n_main].reshape(R, _LANES)

        def in_map(ci, ti):
            bi = ci * tiles_per_core + ti
            if has_overflow:
                # Overflow step re-reads a valid block; kernel skips its math.
                bi = jnp.minimum(bi, num_tiles - 1)
            return (bi, 0)

        kernel = functools.partial(
            _margin_ties_kernel,
            num_tiles=num_tiles,
            tiles_per_core=tiles_per_core,
            tile_rows=tile_rows,
            chunk_rows=chunk_rows,
            last_valid_rows=last_valid_rows,
            has_overflow=has_overflow,
        )

        partials = pl.pallas_call(
            kernel,
            out_shape=jax.ShapeDtypeStruct(
                (grid_cores, _SUBLANES, _LANES), jnp.float32),
            grid_spec=pltpu.PrefetchScalarGridSpec(
                num_scalar_prefetch=0,
                grid=(grid_cores, tiles_per_core),
                in_specs=[
                    pl.BlockSpec(memory_space=pltpu.SMEM),        # margin scalar
                    pl.BlockSpec((tile_rows, _LANES), in_map),
                    pl.BlockSpec((tile_rows, _LANES), in_map),
                ],
                out_specs=pl.BlockSpec((1, _SUBLANES, _LANES),
                                       lambda ci, ti: (ci, 0, 0)),
            ),
            compiler_params=pltpu.CompilerParams(
                dimension_semantics=("parallel", "arbitrary"),
                vmem_limit_bytes=_VMEM_LIMIT_BYTES,
            ),
            cost_estimate=pl.CostEstimate(
                flops=5 * n_main,
                transcendentals=0,
                bytes_accessed=2 * n_main * itemsize
                + grid_cores * _SUBLANES * _LANES * 4 + 4,
            ),
        )(margin_arr, a2, b2)

        total = total + jnp.sum(partials)
        tail_start = n_main

    if tail_start < n:
        # Sub-tile tail (< 128 elems when the kernel ran; tiny inputs otherwise).
        at = a.reshape(-1)[tail_start:].astype(jnp.float32)
        bt = b.reshape(-1)[tail_start:].astype(jnp.float32)
        total = total + jnp.sum(jnp.maximum(jnp.abs(at - bt) - margin_arr[0], 0.0))

    # n == 0 -> nan, matching torch.mean of an empty tensor.
    return total / jnp.float32(n)


def _reference(input1, input2, margin):
    hinge = jnp.maximum(jnp.abs(input1 - input2) - margin, 0.0)
    return jnp.mean(hinge)


if __name__ == "__main__":
    key = jax.random.PRNGKey(0)
    k1, k2, k3, k4, k5, k6, k7, k8 = jax.random.split(key, 8)

    # Primary example: (2, 4, 16, 16) f32, margin 0.5 (evenly tiled, 1-core grid).
    shape = (2, 4, 16, 16)
    x1 = jax.random.normal(k1, shape, dtype=jnp.float32)
    x2 = jax.random.normal(k2, shape, dtype=jnp.float32)
    out = jax.block_until_ready(margin_ranking_loss_with_ties(x1, x2, margin=0.5))
    ref = _reference(x1, x2, 0.5)
    assert jnp.allclose(out, ref, rtol=1e-5, atol=1e-6), (out, ref)

    # Ragged size: masked last tile, 2-core grid split, and <128-element tail.
    shape2 = (13, 1283)
    y1 = jax.random.normal(k3, shape2, dtype=jnp.float32)
    y2 = jax.random.normal(k4, shape2, dtype=jnp.float32)
    out2 = jax.block_until_ready(margin_ranking_loss_with_ties(y1, y2, margin=0.25))
    ref2 = _reference(y1, y2, 0.25)
    assert jnp.allclose(out2, ref2, rtol=1e-5, atol=1e-6), (out2, ref2)

    # bf16 inputs stay bf16 on the wire; cast to f32 inside the kernel.
    shape3 = (4, 1024)
    z1 = jax.random.normal(k5, shape3, dtype=jnp.bfloat16)
    z2 = jax.random.normal(k6, shape3, dtype=jnp.bfloat16)
    out3 = jax.block_until_ready(margin_ranking_loss_with_ties(z1, z2, margin=0.1))
    ref3 = _reference(z1.astype(jnp.float32), z2.astype(jnp.float32), 0.1)
    assert jnp.allclose(out3, ref3, rtol=1e-4, atol=1e-5), (out3, ref3)

    # Larger streaming case: multiple tiles per core, exercises the chunk loop.
    shape4 = (96, 2048)
    w1 = jax.random.normal(k7, shape4, dtype=jnp.float32)
    w2 = jax.random.normal(k8, shape4, dtype=jnp.float32)
    out4 = jax.block_until_ready(margin_ranking_loss_with_ties(w1, w2, margin=0.3))
    ref4 = _reference(w1, w2, 0.3)
    assert jnp.allclose(out4, ref4, rtol=1e-5, atol=1e-6), (out4, ref4)

    print("KERNEL_OK")
</pallas_src>

<mosaic_0001>
module attributes {stable_mosaic.version = 11 : i64} {
  func.func @_margin_ties_kernel(%arg0: i32, %arg1: i32, %arg2: memref<1xf32, #tpu.memory_space<smem>>, %arg3: memref<16x128xf32, #tpu.memory_space<vmem>>, %arg4: memref<16x128xf32, #tpu.memory_space<vmem>>, %arg5: memref<1x8x128xf32, #tpu.memory_space<vmem>>) attributes {dimension_semantics = [#tpu.dimension_semantics<parallel>, #tpu.dimension_semantics<arbitrary>], iteration_bounds = array<i64: 1, 1>, scalar_prefetch = 0 : i64, scratch_operands = 0 : i64, tpu.core_type = #tpu.core_type<tc>, window_params = [{transform_indices = @transform_0, window_bounds = array<i64: 1>}, {transform_indices = @transform_1, window_bounds = array<i64: 16, 128>}, {transform_indices = @transform_2, window_bounds = array<i64: 16, 128>}, {transform_indices = @transform_3, window_bounds = array<i64: 1, 8, 128>}]} {
    %c0_i32 = arith.constant 0 : i32
    %0 = arith.cmpi eq, %arg1, %c0_i32 : i32
    %1 = arith.extui %0 : i1 to i32
    %c0_i32_0 = arith.constant 0 : i32
    %2 = arith.cmpi ne, %1, %c0_i32_0 : i32
    scf.if %2 {
      %cst_11 = arith.constant 0.000000e+00 : f32
      %24 = vector.broadcast %cst_11 : f32 to vector<1x8x128xf32>
      %c0_12 = arith.constant 0 : index
      %c0_13 = arith.constant 0 : index
      %c0_14 = arith.constant 0 : index
      %25 = vector.load %arg5[%c0_12, %c0_13, %c0_14] : memref<1x8x128xf32, #tpu.memory_space<vmem>>, vector<1x8x128xf32>
      tpu.vector_store %arg5[%c0_12, %c0_13, %c0_14], %24 {strides = array<i32>} : memref<1x8x128xf32, #tpu.memory_space<vmem>>, vector<1x8x128xf32>,
    } else {
    }
    %c0 = arith.constant 0 : index
    %3 = memref.load %arg2[%c0] : memref<1xf32, #tpu.memory_space<smem>>
    %c0_i32_1 = arith.constant 0 : i32
    %c16_i32 = arith.constant 16 : i32
    %4 = arith.muli %c0_i32_1, %c16_i32 : i32
    %5 = tpu.assume_multiple %4, 16 : i32
    %6 = arith.index_cast %5 : i32 to index
    %c0_2 = arith.constant 0 : index
    %7 = vector.load %arg3[%6, %c0_2] : memref<16x128xf32, #tpu.memory_space<vmem>>, vector<16x128xf32>
    %8 = arith.index_cast %5 : i32 to index
    %c0_3 = arith.constant 0 : index
    %9 = vector.load %arg4[%8, %c0_3] : memref<16x128xf32, #tpu.memory_space<vmem>>, vector<16x128xf32>
    %10 = arith.subf %7, %9 : vector<16x128xf32>
    %11 = math.absf %10 : vector<16x128xf32>
    %12 = vector.broadcast %3 : f32 to vector<16x128xf32>
    %13 = arith.subf %11, %12 : vector<16x128xf32>
    %cst = arith.constant 0.000000e+00 : f32
    %14 = vector.broadcast %cst : f32 to vector<16x128xf32>
    %15 = arith.maximumf %13, %14 : vector<16x128xf32>
    %c0_4 = arith.constant 0 : index
    %c0_5 = arith.constant 0 : index
    %c0_6 = arith.constant 0 : index
    %16 = vector.load %arg5[%c0_4, %c0_5, %c0_6] : memref<1x8x128xf32, #tpu.memory_space<vmem>>, vector<1x8x128xf32>
    %17 = vector.shape_cast %16 : vector<1x8x128xf32> to vector<8x128xf32>
    %18 = vector.shape_cast %15 : vector<16x128xf32> to vector<2x8x128xf32>
    %cst_7 = arith.constant dense<0.000000e+00> : vector<8x128xf32>
    %19 = vector.multi_reduction <add>, %18, %cst_7 [0] : vector<2x8x128xf32> to vector<8x128xf32>
    %20 = arith.addf %17, %19 : vector<8x128xf32>
    %c0_8 = arith.constant 0 : index
    %c0_9 = arith.constant 0 : index
    %c0_10 = arith.constant 0 : index
    %21 = vector.load %arg5[%c0_8, %c0_9, %c0_10] : memref<1x8x128xf32, #tpu.memory_space<vmem>>, vector<1x8x128xf32>
    %22 = vector.shape_cast %21 : vector<1x8x128xf32> to vector<8x128xf32>
    %23 = vector.shape_cast %20 : vector<8x128xf32> to vector<1x8x128xf32>
    tpu.vector_store %arg5[%c0_8, %c0_9, %c0_10], %23 {strides = array<i32>} : memref<1x8x128xf32, #tpu.memory_space<vmem>>, vector<1x8x128xf32>,
    %c1_i32 = arith.constant 1 : i32
    return
  }
  func.func @transform_0(%arg0: i32, %arg1: i32) -> i32 {
    %c0_i32 = arith.constant 0 : i32
    %c0_i32_0 = arith.constant 0 : i32
    return %c0_i32 : i32
  }
  func.func @transform_1(%arg0: i32, %arg1: i32) -> (i32, i32) {
    %c1_i32 = arith.constant 1 : i32
    %0 = arith.muli %arg0, %c1_i32 : i32
    %1 = arith.addi %0, %arg1 : i32
    %c0_i32 = arith.constant 0 : i32
    %c0_i32_0 = arith.constant 0 : i32
    return %1, %c0_i32 : i32, i32
  }
  func.func @transform_2(%arg0: i32, %arg1: i32) -> (i32, i32) {
    %c1_i32 = arith.constant 1 : i32
    %0 = arith.muli %arg0, %c1_i32 : i32
    %1 = arith.addi %0, %arg1 : i32
    %c0_i32 = arith.constant 0 : i32
    %c0_i32_0 = arith.constant 0 : i32
    return %1, %c0_i32 : i32, i32
  }
  func.func @transform_3(%arg0: i32, %arg1: i32) -> (i32, i32, i32) {
    %c0_i32 = arith.constant 0 : i32
    %c0_i32_0 = arith.constant 0 : i32
    %c0_i32_1 = arith.constant 0 : i32
    return %arg0, %c0_i32, %c0_i32_0 : i32, i32, i32
  }
}

</mosaic_0001>

<bundles_post_ra>
// kernel: tpu_custom_call.1
= control target key start
LH: loop header
LB: loop body
LE: loop exit
PB: predicated region body
PF: predicated region fallthrough
CT: control target
= control target key end

     0   :  { %9 = vsyncpa [#allocation4], 0  ;;  %s237_s0 = inlined_call_operand.<no memory space> [shape: f32[1], index: 0, kind: input, shape index: {}]   ;;  %s238_s1 = inlined_call_operand.hbm [shape: f32[16,128], index: 1, kind: input, shape index: {}]   ;;  %s239_s2 = inlined_call_operand.hbm [shape: f32[16,128], index: 2, kind: input, shape index: {}]   ;;  %s240_s3 = inlined_call_operand.hbm [shape: f32[1,8,128], index: 3, kind: output, shape index: {}]  }
   0x1   :  { %10 = vsyncpa [#allocation7], 0 }
   0x2   :  { %11 = vsyncpa [#allocation5], 0  ;;  %s173_s12 = smov [#allocation3]   ;;  %s101_s16 = scalar_lea.hbm %s238_s1, 256 }
   0x3   :  { %s23_s13 = sshll.u32 %s173_s12, 4  ;;  %p102_p0 = scmp.ne.s32.totalorder %s238_s1, %s101_s16  ;;  %s24_s13 = int_to_ptr.vmem [resolvable:$true] %s23_s13 }
   0x4   :  { %p105_p1 = scmp.lt.u32.totalorder %s101_s16, %s238_s1 }
   0x6   :  { %p107_p2 = pnand %p105_p1, %p102_p0 }
   0x8   :  { %110 = shalt.err (!%p107_p2)
}
   0x9   :  { %s111_s21 = scalar_lea.vmem %s24_s13, 256  ;;  %p116_p4 = scmp.lt.s32.totalorder %s24_s13, %s24_s13 }
   0xa   :  { %p112_p3 = scmp.ne.s32.totalorder %s24_s13, %s111_s21  ;;  %p117_p5 = scmp.lt.s32.totalorder %s111_s21, %s111_s21 }
   0xc   :  { %p118_p6 = por %p117_p5, %p116_p4 }
   0xe   :  { %p119_p7 = pnand %p118_p6, %p112_p3 }
  0x10   :  { %122 = shalt.err (!%p119_p7)
}
  0x11   :  { %s174_s22 = smov 128   ;;  %s175_s23 = smov 8  }
  0x12   :  { %29 = dma.hbm_to_vmem [thread:$0]  %s238_s1, 256, %s24_s13, [#allocation4], %s174_s22, %s174_s22, %s175_s23  }
  0x13   :  { %s176_s26 = smov [#allocation6]   ;;  %s123_s30 = scalar_lea.hbm %s239_s2, 256 }
  0x14   :  { %s39_s27 = sshll.u32 %s176_s26, 4  ;;  %p124_p8 = scmp.ne.s32.totalorder %s239_s2, %s123_s30  ;;  %s40_s27 = int_to_ptr.vmem [resolvable:$true] %s39_s27 }
  0x15   :  { %p127_p9 = scmp.lt.u32.totalorder %s123_s30, %s239_s2 }
  0x17   :  { %p129_p10 = pnand %p127_p9, %p124_p8 }
  0x19   :  { %132 = shalt.err (!%p129_p10)
}
  0x1a   :  { %s133_s8 = scalar_lea.vmem %s40_s27, 256  ;;  %p138_p12 = scmp.lt.s32.totalorder %s40_s27, %s40_s27 }
  0x1b   :  { %p134_p11 = scmp.ne.s32.totalorder %s40_s27, %s133_s8  ;;  %p139_p13 = scmp.lt.s32.totalorder %s133_s8, %s133_s8 }
  0x1d   :  { %p140_p0 = por %p139_p13, %p138_p12 }
  0x1f   :  { %p141_p1 = pnand %p140_p0, %p134_p11 }
  0x21   :  { %144 = shalt.err (!%p141_p1)
}
  0x22   :  { %45 = dma.hbm_to_vmem [thread:$0]  %s239_s2, 256, %s40_s27, [#allocation7], %s174_s22, %s174_s22, %s175_s23  }
  0x23   :  { %167 = dma.done.wait [#allocation4], 256  }
  0x24   :  { %168 = vsyncadd [#allocation4], 4294967040 }
  0x25   :  { %169 = dma.done.wait [#allocation7], 256  }
  0x26   :  { %170 = vsyncadd [#allocation7], 4294967040  ;;  %v62_v0 = vld [vmem:[#allocation3] sm:$0xff]  ;;  %v63_v1 = vld [vmem:[#allocation3 + $0x8] sm:$0xff]  ;;  %v70_v6 = vstv %s237_s0  ;;  %s177_s2 = smov [#allocation8]  }
  0x27   :  { %v64_v2 = vld [vmem:[#allocation6] sm:$0xff]  ;;  %v65_v3 = vld [vmem:[#allocation6 + $0x8] sm:$0xff]  ;;  %s85_s12 = sshll.u32 %s177_s2, 4  ;;  %s86_s12 = int_to_ptr.vmem [resolvable:$true] %s85_s12 }
  0x28   :  { %v66_v4 = vsub.f32 %v62_v0, %v64_v2  ;;  %v67_v5 = vsub.f32 %v63_v1, %v65_v3  ;;  %s145_s13 = scalar_lea.vmem %s86_s12, 128  ;;  %p150_p3 = scmp.lt.s32.totalorder %s86_s12, %s86_s12 }
  0x29   :  { %p146_p2 = scmp.ne.s32.totalorder %s86_s12, %s145_s13  ;;  %p151_p4 = scmp.lt.s32.totalorder %s145_s13, %s145_s13 }
  0x2a   :  { %v68_v7 = vand.u32 2147483647, %v66_v4  ;;  %v69_v8 = vand.u32 2147483647, %v67_v5 }
  0x2b   :  { %p152_p5 = por %p151_p4, %p150_p3 }
  0x2c   :  { %v71_v9 = vsub.f32 %v68_v7, %v70_v6  ;;  %v72_v10 = vsub.f32 %v69_v8, %v70_v6 }
  0x2d   :  { %p153_p6 = pnand %p152_p5, %p146_p2 }
  0x2e   :  { %v73_v11 = vmax.f32 %v71_v9, 0.0  ;;  %v74_v12 = vmax.f32 %v72_v10, 0.0 }
  0x30   :  { %v76_v13 = vadd.f32 %v74_v12, %v73_v11 }
  0x32   :  { %78 = vst [vmem:[#allocation8] sm:$0xff] %v76_v13 }
  0x33   :  { %156 = shalt.err (!%p153_p6)
}
  0x34   :  { %s157_s15 = scalar_lea.hbm %s240_s3, 128 }
  0x35   :  { %p158_p7 = scmp.ne.s32.totalorder %s240_s3, %s157_s15  ;;  %p161_p8 = scmp.lt.u32.totalorder %s157_s15, %s240_s3 }
  0x37   :  { %p163_p9 = pnand %p161_p8, %p158_p7 }
  0x39   :  { %166 = shalt.err (!%p163_p9)
}
  0x3a   :  { %88 = dma.vmem_to_hbm [thread:$0]  %s86_s12, 128, %s240_s3, [#allocation5]  }
  0x3b   :  { %171 = dma.done.wait [#allocation5], 128  }
  0x3c   :  { %172 = vsyncadd [#allocation5], 4294967168 }
  0x3d   :  { %92 = vsyncpa [#allocation4], 1 }
  0x3e   :  { %93 = vsyncpa [#allocation7], 1 }
  0x3f   :  { %94 = vsyncpa [#allocation5], 1 }

</bundles_post_ra>
